<compile_context>
chip_gen: v6e
topology: v6e:2x2x1
jax: 0.10.0
libtpu: 0.0.40
codegen_flags: <defaults>
</compile_context>

<pallas_src>
import functools

import jax
import jax.numpy as jnp
from jax import lax
from jax.experimental import pallas as pl
from jax.experimental.pallas import tpu as pltpu

_LANES = 128      # lane-dense per-bin slab width (bins padded 15 -> 128)
_ACC_ROWS = 8     # sublane-padded rows: 0=count, 1=conf_sum, 2=acc_sum, 3..7 zero


def _ece_partial_kernel(logits_ref, labels_ref, out_ref, *, n_total, n_bins):
    i = pl.program_id(0)

    x = logits_ref[...].astype(jnp.float32)            # (T, C) — cast after load
    labels = labels_ref[...]                            # (T, 1) int32
    t, c = x.shape

    # Valid-row mask for the (possibly ragged) last tile.
    row = lax.broadcasted_iota(jnp.int32, (t, 1), 0)
    valid = (i * t + row) < n_total                      # (T, 1) bool

    # Confidence = max of softmax = 1 / sum(exp(x - max(x)))  (no softmax tensor).
    m = jnp.max(x, axis=1, keepdims=True)                # (T, 1)
    denom = jnp.sum(jnp.exp(x - m), axis=1, keepdims=True)
    conf = jnp.where(valid, 1.0 / denom, 0.0)            # exact divide (parity w/ torch)

    # Prediction = first argmax of logits (same as argmax of softmax, torch tie rule).
    col = lax.broadcasted_iota(jnp.int32, x.shape, 1)
    pred = jnp.min(jnp.where(x == m, col, c), axis=1, keepdims=True)   # (T, 1)
    acc = (pred == labels).astype(jnp.float32)            # (T, 1)

    # Per-bin membership on a lane-dense (T, 128) slab; bins beyond n_bins stay empty.
    lane_i = lax.broadcasted_iota(jnp.int32, (t, _LANES), 1)
    lane_f = lane_i.astype(jnp.float32)
    inv_bins = jnp.float32(1.0 / n_bins)
    lower = lane_f * inv_bins
    upper = (lane_f + 1.0) * inv_bins
    in_bin = (conf > lower) & (conf <= upper) & (lane_i < n_bins) & valid
    in_binf = in_bin.astype(jnp.float32)                  # (T, 128)

    count = jnp.sum(in_binf, axis=0, keepdims=True)                # (1, 128)
    conf_sum = jnp.sum(in_binf * conf, axis=0, keepdims=True)      # (1, 128)
    acc_sum = jnp.sum(in_binf * acc, axis=0, keepdims=True)        # (1, 128)

    # Pack the three partial rows into one dense (8, 128) store (no masked vst).
    slab_row = lax.broadcasted_iota(jnp.int32, (_ACC_ROWS, _LANES), 0)
    slab = (jnp.where(slab_row == 0, count, 0.0)
            + jnp.where(slab_row == 1, conf_sum, 0.0)
            + jnp.where(slab_row == 2, acc_sum, 0.0))
    out_ref[0] = slab


def ece_loss(logits, labels, n_bins: int = 15, tile_n: int | None = None):
    """logits: (N, C) float (f32 or bf16), labels: (N,) int. Returns (1,) f32 ECE."""
    n, c = logits.shape

    # Tile-size selection: default 512 rows; keep sublane alignment for packed dtypes.
    itemsize = jnp.dtype(logits.dtype).itemsize
    align = max(8, 32 // max(1, itemsize))        # 8 for f32, 16 for bf16
    if tile_n is None:
        tile_n = 512
    if tile_n >= n:
        tile_n = n                                # block == full dim is always legal
    else:
        tile_n = max(align, (tile_n // align) * align)
        if tile_n >= n:
            tile_n = n
    num_tiles = pl.cdiv(n, tile_n)

    labels2 = labels.reshape(n, 1).astype(jnp.int32)

    kernel = functools.partial(_ece_partial_kernel, n_total=n, n_bins=n_bins)

    partial = pl.pallas_call(
        kernel,
        out_shape=jax.ShapeDtypeStruct((num_tiles, _ACC_ROWS, _LANES), jnp.float32),
        grid=(num_tiles,),
        in_specs=[
            pl.BlockSpec((tile_n, c), lambda i: (i, 0)),
            pl.BlockSpec((tile_n, 1), lambda i: (i, 0)),
        ],
        out_specs=pl.BlockSpec((1, _ACC_ROWS, _LANES), lambda i: (i, 0, 0)),
        compiler_params=pltpu.CompilerParams(
            dimension_semantics=("parallel",)),   # both TCs on v7x; harmless elsewhere
    )(logits, labels2)

    # Tiny finalize (3 x n_bins values) in plain JAX: reduce partials, weighted gaps.
    sums = jnp.sum(partial, axis=0)               # (8, 128)
    count = sums[0, :n_bins]
    conf_sum = sums[1, :n_bins]
    acc_sum = sums[2, :n_bins]
    prop = count / jnp.float32(n)
    safe = jnp.where(count > 0, count, 1.0)
    gap = jnp.abs(conf_sum / safe - acc_sum / safe)
    ece = jnp.sum(jnp.where(count > 0, gap * prop, 0.0))
    return ece.reshape(1).astype(jnp.float32)


def _ece_reference(logits, labels, n_bins: int = 15):
    """Pure-JAX reference mirroring the torch module."""
    sm = jax.nn.softmax(logits.astype(jnp.float32), axis=1)
    conf = jnp.max(sm, axis=1)
    pred = jnp.argmax(sm, axis=1)
    acc = (pred == labels).astype(jnp.float32)
    boundaries = jnp.linspace(0.0, 1.0, n_bins + 1, dtype=jnp.float32)
    ece = jnp.zeros((1,), jnp.float32)
    for lo, hi in zip(boundaries[:-1], boundaries[1:]):
        in_bin = jnp.logical_and(conf > lo, conf <= hi)
        prop = jnp.mean(in_bin.astype(jnp.float32))
        cnt = jnp.sum(in_bin.astype(jnp.float32))
        safe = jnp.where(cnt > 0, cnt, 1.0)
        acc_b = jnp.sum(jnp.where(in_bin, acc, 0.0)) / safe
        conf_b = jnp.sum(jnp.where(in_bin, conf, 0.0)) / safe
        ece = ece + jnp.where(cnt > 0, jnp.abs(conf_b - acc_b) * prop, 0.0)
    return ece


if __name__ == "__main__":
    key = jax.random.PRNGKey(0)
    k1, k2 = jax.random.split(key)
    N, C = 64, 16                                  # small synthetic shapes
    logits = jax.random.normal(k1, (N, C), dtype=jnp.float32) * 3.0
    labels = jax.random.randint(k2, (N,), 0, C, dtype=jnp.int32)

    ref = jax.block_until_ready(_ece_reference(logits, labels))

    # Default tiling (single tile for this small N).
    out1 = jax.block_until_ready(ece_loss(logits, labels))
    # Multi-tile path (4 grid steps, parallel axis).
    out2 = jax.block_until_ready(ece_loss(logits, labels, tile_n=16))
    # Ragged last tile path (3 tiles of 24 rows over N=64).
    out3 = jax.block_until_ready(ece_loss(logits, labels, tile_n=24))
    # bf16 ingestion path (dtype stays bf16 on the HBM wire, cast in-kernel).
    out_bf16 = jax.block_until_ready(
        ece_loss(logits.astype(jnp.bfloat16), labels, tile_n=32))

    assert out1.shape == (1,)
    assert jnp.allclose(out1, ref, atol=1e-5), (out1, ref)
    assert jnp.allclose(out2, ref, atol=1e-5), (out2, ref)
    assert jnp.allclose(out3, ref, atol=1e-5), (out3, ref)
    assert bool(jnp.isfinite(out_bf16).all())
    print("KERNEL_OK")
</pallas_src>

<mosaic_0001>
module attributes {stable_mosaic.version = 11 : i64} {
  func.func @_ece_partial_kernel(%arg0: i32, %arg1: memref<64x16xf32, #tpu.memory_space<vmem>>, %arg2: memref<64x1xi32, #tpu.memory_space<vmem>>, %arg3: memref<1x8x128xf32, #tpu.memory_space<vmem>>) attributes {dimension_semantics = [#tpu.dimension_semantics<parallel>], iteration_bounds = array<i64: 1>, scalar_prefetch = 0 : i64, scratch_operands = 0 : i64, tpu.core_type = #tpu.core_type<tc>, window_params = [{transform_indices = @transform_0, window_bounds = array<i64: 64, 16>}, {transform_indices = @transform_1, window_bounds = array<i64: 64, 1>}, {transform_indices = @transform_2, window_bounds = array<i64: 1, 8, 128>}]} {
    %c0 = arith.constant 0 : index
    %c0_0 = arith.constant 0 : index
    %0 = vector.load %arg1[%c0, %c0_0] : memref<64x16xf32, #tpu.memory_space<vmem>>, vector<64x16xf32>
    %c0_1 = arith.constant 0 : index
    %c0_2 = arith.constant 0 : index
    %1 = vector.load %arg2[%c0_1, %c0_2] : memref<64x1xi32, #tpu.memory_space<vmem>>, vector<64x1xi32>
    %2 = tpu.iota {dimensions = array<i32: 0>} : vector<64x1xi32>
    %c64_i32 = arith.constant 64 : i32
    %3 = arith.muli %arg0, %c64_i32 : i32
    %4 = vector.broadcast %3 : i32 to vector<64x1xi32>
    %5 = arith.addi %4, %2 : vector<64x1xi32>
    %c64_i32_3 = arith.constant 64 : i32
    %6 = vector.broadcast %c64_i32_3 : i32 to vector<64x1xi32>
    %7 = arith.cmpi slt, %5, %6 : vector<64x1xi32>
    %cst = arith.constant dense<0xFF800000> : vector<64xf32>
    %8 = vector.multi_reduction <maximumf>, %0, %cst [1] : vector<64x16xf32> to vector<64xf32>
    %9 = vector.shape_cast %8 : vector<64xf32> to vector<64x1xf32>
    %10 = vector.broadcast %9 : vector<64x1xf32> to vector<64x16xf32>
    %11 = arith.subf %0, %10 : vector<64x16xf32>
    %12 = math.exp %11 : vector<64x16xf32>
    %cst_4 = arith.constant dense<0.000000e+00> : vector<64xf32>
    %13 = vector.multi_reduction <add>, %12, %cst_4 [1] : vector<64x16xf32> to vector<64xf32>
    %14 = vector.shape_cast %13 : vector<64xf32> to vector<64x1xf32>
    %cst_5 = arith.constant 1.000000e+00 : f32
    %15 = vector.broadcast %cst_5 : f32 to vector<64x1xf32>
    %16 = arith.divf %15, %14 : vector<64x1xf32>
    %cst_6 = arith.constant 0.000000e+00 : f32
    %17 = vector.broadcast %cst_6 : f32 to vector<64x1xf32>
    %18 = arith.select %7, %16, %17 : vector<64x1xi1>, vector<64x1xf32>
    %19 = tpu.iota {dimensions = array<i32: 1>} : vector<64x16xi32>
    %20 = vector.broadcast %9 : vector<64x1xf32> to vector<64x16xf32>
    %21 = arith.cmpf oeq, %0, %20 : vector<64x16xf32>
    %c16_i32 = arith.constant 16 : i32
    %22 = vector.broadcast %c16_i32 : i32 to vector<64x16xi32>
    %23 = arith.select %21, %19, %22 : vector<64x16xi1>, vector<64x16xi32>
    %cst_7 = arith.constant dense<2147483647> : vector<64xi32>
    %24 = vector.multi_reduction <minsi>, %23, %cst_7 [1] : vector<64x16xi32> to vector<64xi32>
    %25 = vector.shape_cast %24 : vector<64xi32> to vector<64x1xi32>
    %26 = arith.cmpi eq, %25, %1 : vector<64x1xi32>
    %27 = arith.extui %26 : vector<64x1xi1> to vector<64x1xi32>
    %28 = arith.sitofp %27 : vector<64x1xi32> to vector<64x1xf32>
    %29 = tpu.iota {dimensions = array<i32: 1>} : vector<64x128xi32>
    %30 = arith.sitofp %29 : vector<64x128xi32> to vector<64x128xf32>
    %cst_8 = arith.constant 0.0666666701 : f32
    %31 = vector.broadcast %cst_8 : f32 to vector<64x128xf32>
    %32 = arith.mulf %30, %31 : vector<64x128xf32>
    %cst_9 = arith.constant 1.000000e+00 : f32
    %33 = vector.broadcast %cst_9 : f32 to vector<64x128xf32>
    %34 = arith.addf %30, %33 : vector<64x128xf32>
    %cst_10 = arith.constant 0.0666666701 : f32
    %35 = vector.broadcast %cst_10 : f32 to vector<64x128xf32>
    %36 = arith.mulf %34, %35 : vector<64x128xf32>
    %37 = vector.broadcast %18 : vector<64x1xf32> to vector<64x128xf32>
    %38 = arith.cmpf ogt, %37, %32 : vector<64x128xf32>
    %39 = vector.broadcast %18 : vector<64x1xf32> to vector<64x128xf32>
    %40 = arith.cmpf ole, %39, %36 : vector<64x128xf32>
    %41 = arith.andi %38, %40 : vector<64x128xi1>
    %c15_i32 = arith.constant 15 : i32
    %42 = vector.broadcast %c15_i32 : i32 to vector<64x128xi32>
    %43 = arith.cmpi slt, %29, %42 : vector<64x128xi32>
    %44 = arith.andi %41, %43 : vector<64x128xi1>
    %45 = vector.broadcast %7 : vector<64x1xi1> to vector<64x128xi1>
    %46 = arith.andi %44, %45 : vector<64x128xi1>
    %47 = arith.extui %46 : vector<64x128xi1> to vector<64x128xi32>
    %48 = arith.sitofp %47 : vector<64x128xi32> to vector<64x128xf32>
    %cst_11 = arith.constant dense<0.000000e+00> : vector<128xf32>
    %49 = vector.multi_reduction <add>, %48, %cst_11 [0] : vector<64x128xf32> to vector<128xf32>
    %50 = vector.shape_cast %49 : vector<128xf32> to vector<1x128xf32>
    %51 = vector.broadcast %18 : vector<64x1xf32> to vector<64x128xf32>
    %52 = arith.mulf %48, %51 : vector<64x128xf32>
    %cst_12 = arith.constant dense<0.000000e+00> : vector<128xf32>
    %53 = vector.multi_reduction <add>, %52, %cst_12 [0] : vector<64x128xf32> to vector<128xf32>
    %54 = vector.shape_cast %53 : vector<128xf32> to vector<1x128xf32>
    %55 = vector.broadcast %28 : vector<64x1xf32> to vector<64x128xf32>
    %56 = arith.mulf %48, %55 : vector<64x128xf32>
    %cst_13 = arith.constant dense<0.000000e+00> : vector<128xf32>
    %57 = vector.multi_reduction <add>, %56, %cst_13 [0] : vector<64x128xf32> to vector<128xf32>
    %58 = vector.shape_cast %57 : vector<128xf32> to vector<1x128xf32>
    %59 = tpu.iota {dimensions = array<i32: 0>} : vector<8x128xi32>
    %c0_i32 = arith.constant 0 : i32
    %60 = vector.broadcast %c0_i32 : i32 to vector<8x128xi32>
    %61 = arith.cmpi eq, %59, %60 : vector<8x128xi32>
    %cst_14 = arith.constant 0.000000e+00 : f32
    %62 = vector.shape_cast %50 : vector<1x128xf32> to vector<1x128xf32>
    %63 = vector.broadcast %62 : vector<1x128xf32> to vector<8x128xf32>
    %64 = vector.broadcast %cst_14 : f32 to vector<8x128xf32>
    %65 = arith.select %61, %63, %64 : vector<8x128xi1>, vector<8x128xf32>
    %c1_i32 = arith.constant 1 : i32
    %66 = vector.broadcast %c1_i32 : i32 to vector<8x128xi32>
    %67 = arith.cmpi eq, %59, %66 : vector<8x128xi32>
    %cst_15 = arith.constant 0.000000e+00 : f32
    %68 = vector.shape_cast %54 : vector<1x128xf32> to vector<1x128xf32>
    %69 = vector.broadcast %68 : vector<1x128xf32> to vector<8x128xf32>
    %70 = vector.broadcast %cst_15 : f32 to vector<8x128xf32>
    %71 = arith.select %67, %69, %70 : vector<8x128xi1>, vector<8x128xf32>
    %72 = arith.addf %65, %71 : vector<8x128xf32>
    %c2_i32 = arith.constant 2 : i32
    %73 = vector.broadcast %c2_i32 : i32 to vector<8x128xi32>
    %74 = arith.cmpi eq, %59, %73 : vector<8x128xi32>
    %cst_16 = arith.constant 0.000000e+00 : f32
    %75 = vector.shape_cast %58 : vector<1x128xf32> to vector<1x128xf32>
    %76 = vector.broadcast %75 : vector<1x128xf32> to vector<8x128xf32>
    %77 = vector.broadcast %cst_16 : f32 to vector<8x128xf32>
    %78 = arith.select %74, %76, %77 : vector<8x128xi1>, vector<8x128xf32>
    %79 = arith.addf %72, %78 : vector<8x128xf32>
    %c0_17 = arith.constant 0 : index
    %c0_18 = arith.constant 0 : index
    %c0_19 = arith.constant 0 : index
    %80 = vector.load %arg3[%c0_17, %c0_18, %c0_19] : memref<1x8x128xf32, #tpu.memory_space<vmem>>, vector<1x8x128xf32>
    %81 = vector.shape_cast %80 : vector<1x8x128xf32> to vector<8x128xf32>
    %82 = vector.shape_cast %79 : vector<8x128xf32> to vector<1x8x128xf32>
    tpu.vector_store %arg3[%c0_17, %c0_18, %c0_19], %82 {strides = array<i32>} : memref<1x8x128xf32, #tpu.memory_space<vmem>>, vector<1x8x128xf32>,
    return
  }
  func.func @transform_0(%arg0: i32) -> (i32, i32) {
    %c0_i32 = arith.constant 0 : i32
    %c0_i32_0 = arith.constant 0 : i32
    return %arg0, %c0_i32 : i32, i32
  }
  func.func @transform_1(%arg0: i32) -> (i32, i32) {
    %c0_i32 = arith.constant 0 : i32
    %c0_i32_0 = arith.constant 0 : i32
    return %arg0, %c0_i32 : i32, i32
  }
  func.func @transform_2(%arg0: i32) -> (i32, i32, i32) {
    %c0_i32 = arith.constant 0 : i32
    %c0_i32_0 = arith.constant 0 : i32
    %c0_i32_1 = arith.constant 0 : i32
    return %arg0, %c0_i32, %c0_i32_0 : i32, i32, i32
  }
}

</mosaic_0001>

<bundles_post_ra>
// kernel: tpu_custom_call.1
= control target key start
LH: loop header
LB: loop body
LE: loop exit
PB: predicated region body
PF: predicated region fallthrough
CT: control target
= control target key end

     0   :  { %vm55_vm0 = vcmask 130048   ;;  %s864_s0 = inlined_call_operand.vmem [shape: f32[64,16], index: 0, kind: input, shape index: {}]   ;;  %s865_s1 = inlined_call_operand.vmem [shape: s32[64,1], index: 1, kind: input, shape index: {}]   ;;  %s866_s2 = inlined_call_operand.hbm [shape: f32[1,8,128], index: 2, kind: output, shape index: {}]  }
   0x1   :  { %v610_v0 = vld [vmem:[%s864_s0] sm:$0xff]  ;;  %v615_v1 = vld [vmem:[%s864_s0 + $0x10] sm:$0xff]  ;;  %v620_v2 = vld [vmem:[%s864_s0 + $0x8] sm:$0xff] }
   0x2   :  { %v56_v3 = vsel %vm55_vm0, %v610_v0, -inf  ;;  %v62_v4 = vsel %vm55_vm0, %v615_v1, -inf  ;;  %v629_v5 = vld [vmem:[%s864_s0 + $0x18] sm:$0xff]  ;;  %v59_v6 = vsel %vm55_vm0, %v620_v2, -inf }
   0x3   :  { %57 = vmax.xlane.f32.xlu0 %v56_v3  ;;  %63 = vmax.xlane.f32.xlu1 %v62_v4  ;;  %v65_v7 = vsel %vm55_vm0, %v629_v5, -inf }
   0x4   :  { %7 = vsyncpa [#allocation3], 0  ;;  %v638_v8 = vld [vmem:[%s864_s0 + $0x20] sm:$0xff]  ;;  %v643_v9 = vld [vmem:[%s864_s0 + $0x28] sm:$0xff]  ;;  %v28_v16 = vlaneseq }
   0x5   :  { %v68_v10 = vsel %vm55_vm0, %v638_v8, -inf  ;;  %v71_v11 = vsel %vm55_vm0, %v643_v9, -inf  ;;  %v652_v12 = vld [vmem:[%s864_s0 + $0x30] sm:$0xff]  ;;  %v657_v13 = vld [vmem:[%s864_s0 + $0x38] sm:$0xff] }
   0x6   :  { %v74_v14 = vsel %vm55_vm0, %v652_v12, -inf  ;;  %v77_v15 = vsel %vm55_vm0, %v657_v13, -inf  ;;  %v664_v17 = vand.u32 127, %v28_v16 }
   0x7   :  { %60 = vmax.xlane.f32.xlu0 %v59_v6  ;;  %66 = vmax.xlane.f32.xlu1 %v65_v7 }
   0xb   :  { %69 = vmax.xlane.f32.xlu0 %v68_v10  ;;  %72 = vmax.xlane.f32.xlu1 %v71_v11 }
   0xf   :  { %75 = vmax.xlane.f32.xlu0 %v74_v14  ;;  %78 = vmax.xlane.f32.xlu1 %v77_v15 }
  0x8c   :  { %v58_v18 = vpop.xlane.xlu0 %57  ;;  %v666_v19 = vpop.xlane.xlu1 %63 }
  0x8d   :  { %vm154_vm1 = vcmp.eq.f32.partialorder %v610_v0, %v58_v18  ;;  %vm156_vm2 = vcmp.eq.f32.partialorder %v615_v1, %v666_v19  ;;  %v80_v59 = vsub.f32 %v610_v0, %v58_v18  ;;  %v82_v60 = vsub.f32 %v615_v1, %v666_v19 }
  0x8e   :  { %v162_v20 = vsel %vm154_vm1, %v664_v17, 16  ;;  %v164_v21 = vsel %vm156_vm2, %v664_v17, 16 }
  0x8f   :  { %v170_v22 = vsel %vm55_vm0, %v162_v20, 2147483647  ;;  %v200_v26 = vsel %vm55_vm0, %v164_v21, 2147483647  ;;  %v88_v3 = vmul.f32 1.442695, %v80_v59 }
  0x90   :  { %v674_v23 = vpop.xlane.xlu0 %60  ;;  %v676_v24 = vpop.xlane.xlu1 %66  ;;  %v172_v25 = vshra.s32 %v170_v22, 16  ;;  %v202_v30 = vshra.s32 %v200_v26, 16  ;;  %v171_v58 = vand.u32 65535, %v170_v22  ;;  %v201_v63 = vand.u32 65535, %v200_v26 }
  0x91   :  { %vm155_vm3 = vcmp.eq.f32.partialorder %v620_v2, %v674_v23  ;;  %vm157_vm4 = vcmp.eq.f32.partialorder %v629_v5, %v676_v24  ;;  %v81_v4 = vsub.f32 %v620_v2, %v674_v23  ;;  %v83_v6 = vsub.f32 %v629_v5, %v676_v24 }
  0x92   :  { %v163_v27 = vsel %vm155_vm3, %v664_v17, 16  ;;  %v174_v28 = vcvt.s32.f32 %v172_v25  ;;  %v165_v29 = vsel %vm157_vm4, %v664_v17, 16  ;;  %v204_v36 = vcvt.s32.f32 %v202_v30 }
  0x93   :  { %v185_v33 = vsel %vm55_vm0, %v163_v27, 2147483647  ;;  %v693_v34 = vsel %vm55_vm0, %v165_v29, 2147483647  ;;  %v173_v62 = vcvt.s32.f32 %v171_v58  ;;  %v92_v0 = vmul.f32 1.442695, %v82_v60 }
  0x94   :  { %175 = vmin.xlane.f32.xlu0 %v174_v28  ;;  %v685_v31 = vpop.xlane.xlu0 %69  ;;  %v687_v32 = vpop.xlane.xlu1 %72  ;;  %v187_v38 = vshra.s32 %v185_v33, 16  ;;  %v217_v41 = vshra.s32 %v693_v34, 16  ;;  %v186_v10 = vand.u32 65535, %v185_v33  ;;  %v203_v14 = vcvt.s32.f32 %v201_v63 }
  0x95   :  { %vm158_vm5 = vcmp.eq.f32.partialorder %v638_v8, %v685_v31  ;;  %vm159_vm6 = vcmp.eq.f32.partialorder %v643_v9, %v687_v32  ;;  %v84_v1 = vsub.f32 %v638_v8, %v685_v31  ;;  %535 = vpow2.f32 %v88_v3 }
  0x96   :  { %v166_v35 = vsel %vm158_vm5, %v664_v17, 16  ;;  %v167_v37 = vsel %vm159_vm6, %v664_v17, 16  ;;  %v189_v43 = vcvt.s32.f32 %v187_v38  ;;  %v716_v47 = vcvt.s32.f32 %v217_v41 }
  0x97   :  { %v705_v42 = vsel %vm55_vm0, %v166_v35, 2147483647  ;;  %v710_v44 = vsel %vm55_vm0, %v167_v37, 2147483647  ;;  %v90_v15 = vmul.f32 1.442695, %v81_v4  ;;  %v188_v20 = vcvt.s32.f32 %v186_v10 }
  0x98   :  { %205 = vmin.xlane.f32.xlu0 %v204_v36  ;;  %v699_v39 = vpop.xlane.xlu0 %75  ;;  %v701_v40 = vpop.xlane.xlu1 %78  ;;  %190 = vmin.xlane.f32.xlu1 %v189_v43  ;;  %v232_v48 = vshra.s32 %v705_v42, 16  ;;  %v247_v49 = vshra.s32 %v710_v44, 16  ;;  %v94_v2 = vmul.f32 1.442695, %v83_v6  ;;  %v216_v5 = vand.u32 65535, %v693_v34 }
  0x99   :  { %vm160_vm7 = vcmp.eq.f32.partialorder %v652_v12, %v699_v39  ;;  %vm161_vm8 = vcmp.eq.f32.partialorder %v657_v13, %v701_v40  ;;  %v231_v21 = vand.u32 65535, %v705_v42  ;;  %537 = vpow2.f32 %v92_v0 }
  0x9a   :  { %v168_v45 = vsel %vm160_vm7, %v664_v17, 16  ;;  %v169_v46 = vsel %vm161_vm8, %v664_v17, 16  ;;  %v234_v51 = vcvt.s32.f32 %v232_v48  ;;  %v728_v54 = vcvt.s32.f32 %v247_v49 }
  0x9b   :  { %v721_v50 = vsel %vm55_vm0, %v168_v45, 2147483647  ;;  %v725_v53 = vsel %vm55_vm0, %v169_v46, 2147483647  ;;  %v96_v22 = vmul.f32 1.442695, %v84_v1  ;;  %v85_v8 = vsub.f32 %v643_v9, %v687_v32 }
  0x9c   :  { %v262_v52 = vshra.s32 %v721_v50, 16  ;;  %220 = vmin.xlane.f32.xlu1 %v716_v47  ;;  %235 = vmin.xlane.f32.xlu0 %v234_v51  ;;  %v277_v56 = vshra.s32 %v725_v53, 16  ;;  %539 = vpow2.f32 %v90_v15  ;;  %v86_v23 = vsub.f32 %v652_v12, %v699_v39  ;;  %v22_v15 = vld [vmem:[%s865_s1 + $0x10] sm:$0xff] }
  0x9d   :  { %541 = vpow2.f32 %v94_v2  ;;  %v218_v27 = vcvt.s32.f32 %v216_v5  ;;  %v246_v29 = vand.u32 65535, %v710_v44  ;;  %v261_v30 = vand.u32 65535, %v721_v50 }
  0x9e   :  { %v730_v55 = vcvt.s32.f32 %v262_v52  ;;  %v735_v57 = vcvt.s32.f32 %v277_v56  ;;  %543 = vpow2.f32 %v96_v22  ;;  %v98_v9 = vmul.f32 1.442695, %v85_v8 }
  0x9f   :  { %v100_v12 = vmul.f32 1.442695, %v86_v23  ;;  %v87_v31 = vsub.f32 %v657_v13, %v701_v40  ;;  %v263_v37 = vcvt.s32.f32 %v261_v30  ;;  %v276_v38 = vand.u32 65535, %v725_v53 }
  0xa0   :  { %250 = vmin.xlane.f32.xlu1 %v728_v54  ;;  %265 = vmin.xlane.f32.xlu0 %v730_v55  ;;  %545 = vpow2.f32 %v98_v9  ;;  %v589_v52 = vmov 0   ;;  %v590_v8 = vmov 0.0  }
  0xa1   :  { %547 = vpow2.f32 %v100_v12  ;;  %v102_v13 = vmul.f32 1.442695, %v87_v31  ;;  %534 = vset.pattern.permute.xlu1 %v589_v52  ;;  %528 = vset.pattern.permute.xlu0 %v589_v52  ;;  %v23_v31 = vld [vmem:[%s865_s1 + $0x18] sm:$0xff] }
  0xa2   :  { %v536_v41 = vpop.eup %535 }
  0xa3   :  { %549 = vpow2.f32 %v102_v13  ;;  %v104_v46 = vsel %vm55_vm0, %v536_v41, 0.0 }
  0xa4   :  { %280 = vmin.xlane.f32.xlu1 %v735_v57 }
  0xa6   :  { %v538_v44 = vpop.eup %537 }
 0x11d   :  { %v741_v61 = vpop.xlane.xlu0 %175 }
 0x11e   :  { %vm177_vm9 = vcmp.eq.f32.partialorder %v174_v28, %v741_v61  ;;  %v233_v28 = vcvt.s32.f32 %v231_v21  ;;  %v21_v21 = vld [vmem:[%s865_s1 + $0x8] sm:$0xff] }
 0x11f   :  { %v178_v7 = vsel %vm177_vm9, %v173_v62, inf  ;;  %v182_v62 = vcvt.f32.s32 %v741_v61  ;;  %v20_v61 = vld [vmem:[%s865_s1] sm:$0xff] }
 0x120   :  { %179 = vmin.xlane.f32.xlu0 %v178_v7 }
 0x121   :  { %v750_v11 = vpop.xlane.xlu0 %205  ;;  %v753_v19 = vpop.xlane.xlu1 %190  ;;  %v183_v6 = vshll.u32 %v182_v62, 16  ;;  %v314_v62 = vcvt.s32.f32 %v664_v17 }
 0x122   :  { %vm207_vm10 = vcmp.eq.f32.partialorder %v204_v36, %v750_v11  ;;  %vm192_vm11 = vcmp.eq.f32.partialorder %v189_v43, %v753_v19  ;;  %v248_v36 = vcvt.s32.f32 %v246_v29  ;;  %v278_v43 = vcvt.s32.f32 %v276_v38 }
 0x123   :  { %v208_v18 = vsel %vm207_vm10, %v203_v14, inf  ;;  %v193_v24 = vsel %vm192_vm11, %v188_v20, inf  ;;  %v212_v3 = vcvt.f32.s32 %v750_v11  ;;  %v197_v7 = vcvt.f32.s32 %v753_v19 }
 0x124   :  { %209 = vmin.xlane.f32.xlu0 %v208_v18  ;;  %194 = vmin.xlane.f32.xlu1 %v193_v24 }
 0x125   :  { %v762_v25 = vpop.xlane.xlu1 %220  ;;  %v764_v26 = vpop.xlane.xlu0 %235  ;;  %v213_v0 = vshll.u32 %v212_v3, 16  ;;  %v198_v5 = vshll.u32 %v197_v7, 16  ;;  %v315_v7 = vmul.f32 0.06666667, %v314_v62 }
 0x126   :  { %vm222_vm12 = vcmp.eq.f32.partialorder %v716_v47, %v762_v25  ;;  %vm237_vm13 = vcmp.eq.f32.partialorder %v234_v51, %v764_v26  ;;  %v540_v47 = vpop.eup %539  ;;  %v110_v51 = vsel %vm55_vm0, %v538_v44, 0.0  ;;  %v227_v2 = vcvt.f32.s32 %v762_v25 }
 0x127   :  { %v223_v32 = vsel %vm222_vm12, %v218_v27, inf  ;;  %v238_v33 = vsel %vm237_vm13, %v233_v28, inf  ;;  %v542_v48 = vpop.eup %541  ;;  %v107_v50 = vsel %vm55_vm0, %v540_v47, 0.0  ;;  %v242_v18 = vcvt.f32.s32 %v764_v26 }
 0x128   :  { %224 = vmin.xlane.f32.xlu1 %v223_v32  ;;  %239 = vmin.xlane.f32.xlu0 %v238_v33  ;;  %v544_v49 = vpop.eup %543  ;;  %v228_v24 = vshll.u32 %v227_v2, 16 }
 0x129   :  { %v773_v34 = vpop.xlane.xlu1 %250  ;;  %v775_v35 = vpop.xlane.xlu0 %265  ;;  %v243_v25 = vshll.u32 %v242_v18, 16 }
 0x12a   :  { %vm252_vm14 = vcmp.eq.f32.partialorder %v728_v54, %v773_v34  ;;  %vm267_vm15 = vcmp.eq.f32.partialorder %v730_v55, %v775_v35  ;;  %v546_v53 = vpop.eup %545  ;;  %v113_v54 = vsel %vm55_vm0, %v542_v48, 0.0  ;;  %v116_v55 = vsel %vm55_vm0, %v544_v49, 0.0 }
 0x12b   :  { %v253_v39 = vsel %vm252_vm14, %v248_v36, inf  ;;  %v268_v40 = vsel %vm267_vm15, %v263_v37, inf  ;;  %v548_v56 = vpop.eup %547  ;;  %v257_v28 = vcvt.f32.s32 %v773_v34  ;;  %v24_v34 = vld [vmem:[%s865_s1 + $0x20] sm:$0xff]  ;;  %vm342_vm14 = vcmp.lt.s32.totalorder %v664_v17, 15 }
 0x12c   :  { %254 = vmin.xlane.f32.xlu1 %v253_v39  ;;  %269 = vmin.xlane.f32.xlu0 %v268_v40  ;;  %v122_v58 = vsel %vm55_vm0, %v548_v56, 0.0  ;;  %v550_v59 = vpop.eup %549  ;;  %v272_v39 = vcvt.f32.s32 %v775_v35 }
 0x12d   :  { %v782_v42 = vpop.xlane.xlu1 %280  ;;  %v125_v60 = vsel %vm55_vm0, %v550_v59, 0.0  ;;  %v258_v13 = vshll.u32 %v257_v28, 16 }
 0x12e   :  { %vm282_vm1 = vcmp.eq.f32.partialorder %v735_v57, %v782_v42  ;;  %v119_v57 = vsel %vm55_vm0, %v546_v53, 0.0  ;;  %v273_v47 = vshll.u32 %v272_v39, 16  ;;  %v287_v48 = vcvt.f32.s32 %v782_v42  ;;  %v27_v42 = vld [vmem:[%s865_s1 + $0x38] sm:$0xff] }
 0x12f   :  { %v283_v45 = vsel %vm282_vm1, %v278_v43, inf }
 0x130   :  { %284 = vmin.xlane.f32.xlu1 %v283_v45  ;;  %105 = vadd.xlane.f32.xlu0 %v104_v46  ;;  %v25_v46 = vld [vmem:[%s865_s1 + $0x28] sm:$0xff]  ;;  %v288_v52 = vshll.u32 %v287_v48, 16 }
 0x134   :  { %108 = vadd.xlane.f32.xlu1 %v107_v50  ;;  %111 = vadd.xlane.f32.xlu0 %v110_v51  ;;  %v26_v51 = vld [vmem:[%s865_s1 + $0x30] sm:$0xff]  ;;  %s591_s1 = smov [#allocation2]  }
 0x135   :  { %s501_s12 = sshll.u32 %s591_s1, 4  ;;  %s502_s12 = int_to_ptr.vmem [resolvable:$true] %s501_s12 }
 0x136   :  { %s567_s13 = scalar_lea.vmem %s502_s12, 128  ;;  %p572_p1 = scmp.lt.s32.totalorder %s502_s12, %s502_s12 }
 0x137   :  { %p568_p0 = scmp.ne.s32.totalorder %s502_s12, %s567_s13  ;;  %p573_p2 = scmp.lt.s32.totalorder %s567_s13, %s567_s13 }
 0x138   :  { %114 = vadd.xlane.f32.xlu1 %v113_v54  ;;  %117 = vadd.xlane.f32.xlu0 %v116_v55 }
 0x139   :  { %p574_p3 = por %p573_p2, %p572_p1 }
 0x13b   :  { %p575_p4 = pnand %p574_p3, %p568_p0 }
 0x13c   :  { %120 = vadd.xlane.f32.xlu1 %v119_v57  ;;  %123 = vadd.xlane.f32.xlu0 %v122_v58 }
 0x140   :  { %126 = vadd.xlane.f32.xlu1 %v125_v60 }
 0x1a9   :  { %v180_v63 = vpop.xlane.xlu0 %179 }
 0x1aa   :  { %v181_v4 = vcvt.f32.s32 %v180_v63  ;;  %v316_v63 = vadd.f32 1.0, %v314_v62 }
 0x1ac   :  { %v184_v14 = vadd.s32 %v183_v6, %v181_v4 }
 0x1ad   :  { %v210_v10 = vpop.xlane.xlu0 %209  ;;  %v195_v11 = vpop.xlane.xlu1 %194 }
 0x1ae   :  { %v211_v1 = vcvt.f32.s32 %v210_v10  ;;  %v196_v19 = vcvt.f32.s32 %v195_v11  ;;  %vm290_vm2 = vcmp.eq.s32.totalorder %v184_v14, %v20_v61  ;;  %v317_v10 = vmul.f32 0.06666667, %v316_v63 }
 0x1af   :  { %v509_v9 = vsel %vm290_vm2, 1.0, %v590_v8 }
 0x1b0   :  { %v214_v20 = vadd.s32 %v213_v0, %v211_v1  ;;  %v199_v22 = vadd.s32 %v198_v5, %v196_v19 }
 0x1b1   :  { %v225_v26 = vpop.xlane.xlu1 %224  ;;  %v240_v27 = vpop.xlane.xlu0 %239 }
 0x1b2   :  { %vm292_vm0 = vcmp.eq.s32.totalorder %v214_v20, %v22_v15  ;;  %vm291_vm3 = vcmp.eq.s32.totalorder %v199_v22, %v21_v21  ;;  %v226_v29 = vcvt.f32.s32 %v225_v26  ;;  %v241_v30 = vcvt.f32.s32 %v240_v27 }
 0x1b3   :  { %v511_v23 = vsel %vm292_vm0, 1.0, %v590_v8  ;;  %v510_v12 = vsel %vm291_vm3, 1.0, %v590_v8 }
 0x1b4   :  { %437 = vperm.xlu1 %534, %v511_v23   ;;  %v229_v32 = vadd.s32 %v228_v24, %v226_v29  ;;  %v244_v33 = vadd.s32 %v243_v25, %v241_v30  ;;  %v529_v36 = vpack.i.bf16 %v510_v12, %v509_v9 }
 0x1b5   :  { %v255_v37 = vpop.xlane.xlu1 %254  ;;  %v270_v38 = vpop.xlane.xlu0 %269 }
 0x1b6   :  { %v256_v40 = vcvt.f32.s32 %v255_v37  ;;  %530 = vperm.xlu0 %528, %v529_v36   ;;  %vm293_vm4 = vcmp.eq.s32.totalorder %v229_v32, %v23_v31  ;;  %v271_v44 = vcvt.f32.s32 %v270_v38  ;;  %vm294_vm5 = vcmp.eq.s32.totalorder %v244_v33, %v24_v34 }
 0x1b7   :  { %v512_v41 = vsel %vm293_vm4, 1.0, %v590_v8  ;;  %v513_v49 = vsel %vm294_vm5, 1.0, %v590_v8 }
 0x1b8   :  { %v259_v43 = vadd.s32 %v258_v13, %v256_v40  ;;  %442 = vperm.xlu1 %534, %v512_v41   ;;  %v274_v35 = vadd.s32 %v273_v47, %v271_v44 }
 0x1b9   :  { %v285_v45 = vpop.xlane.xlu1 %284  ;;  %v106_v57 = vpop.xlane.xlu0 %105 }
 0x1ba   :  { %v286_v50 = vcvt.f32.s32 %v285_v45  ;;  %vm295_vm6 = vcmp.eq.s32.totalorder %v259_v43, %v25_v46  ;;  %vm296_vm7 = vcmp.eq.s32.totalorder %v274_v35, %v26_v51 }
 0x1bb   :  { %v514_v53 = vsel %vm295_vm6, 1.0, %v590_v8  ;;  %v515_v55 = vsel %vm296_vm7, 1.0, %v590_v8 }
 0x1bc   :  { %447 = vperm.xlu1 %534, %v513_v49   ;;  %v289_v54 = vadd.s32 %v288_v52, %v286_v50 }
 0x1bd   :  { %v109_v58 = vpop.xlane.xlu1 %108  ;;  %v112_v59 = vpop.xlane.xlu0 %111 }
 0x1be   :  { %vm297_vm8 = vcmp.eq.s32.totalorder %v289_v54, %v27_v42  ;;  %551 = vrcp.f32 %v109_v58 }
 0x1bf   :  { %v516_v56 = vsel %vm297_vm8, 1.0, %v590_v8  ;;  %553 = vrcp.f32 %v106_v57 }
 0x1c0   :  { %452 = vperm.xlu1 %534, %v514_v53   ;;  %555 = vrcp.f32 %v112_v59 }
 0x1c1   :  { %v115_v60 = vpop.xlane.xlu1 %114  ;;  %v118_v3 = vpop.xlane.xlu0 %117 }
 0x1c2   :  { %557 = vrcp.f32 %v115_v60 }
 0x1c3   :  { %559 = vrcp.f32 %v118_v3 }
 0x1c4   :  { %457 = vperm.xlu1 %534, %v515_v55  }
 0x1c5   :  { %v121_v6 = vpop.xlane.xlu1 %120  ;;  %v124_v14 = vpop.xlane.xlu0 %123 }
 0x1c6   :  { %561 = vrcp.f32 %v121_v6 }
 0x1c7   :  { %563 = vrcp.f32 %v124_v14 }
 0x1c8   :  { %462 = vperm.xlu1 %534, %v516_v56  }
 0x1c9   :  { %v127_v2 = vpop.xlane.xlu1 %126 }
 0x1ca   :  { %565 = vrcp.f32 %v127_v2 }
 0x1cb   :  { %v552_v4 = vpop.eup %551 }
 0x1cc   :  { %v554_v0 = vpop.eup %553  ;;  %vm319_vm9 = vcmp.gt.f32.partialorder %v552_v4, %v315_v7  ;;  %vm327_vm10 = vcmp.le.f32.partialorder %v552_v4, %v317_v10 }
 0x1cd   :  { %vm318_vm11 = vcmp.gt.f32.partialorder %v554_v0, %v315_v7  ;;  %vm326_vm12 = vcmp.le.f32.partialorder %v554_v0, %v317_v10  ;;  %v556_v1 = vpop.eup %555  ;;  %vm335_vm13 = vmand %vm319_vm9, %vm327_vm10 }
 0x1ce   :  { %vm334_vm15 = vmand %vm318_vm11, %vm326_vm12  ;;  %vm320_vm1 = vcmp.gt.f32.partialorder %v556_v1, %v315_v7  ;;  %vm328_vm0 = vcmp.le.f32.partialorder %v556_v1, %v317_v10 }
 0x1cf   :  { %v558_v15 = vpop.eup %557  ;;  %vm344_vm2 = vmand %vm335_vm13, %vm342_vm14 }
 0x1d0   :  { %vm343_vm3 = vmand %vm334_vm15, %vm342_vm14  ;;  %vm321_vm4 = vcmp.gt.f32.partialorder %v558_v15, %v315_v7  ;;  %vm329_vm5 = vcmp.le.f32.partialorder %v558_v15, %v317_v10  ;;  %v518_v18 = vsel %vm344_vm2, 1.0, %v590_v8  ;;  %v560_v61 = vpop.eup %559 }
 0x1d1   :  { %vm336_vm6 = vmand %vm320_vm1, %vm328_vm0  ;;  %v517_v11 = vsel %vm343_vm3, 1.0, %v590_v8  ;;  %v405_v20 = vmul.f32 %v552_v4, %v518_v18  ;;  %vm322_vm10 = vcmp.gt.f32.partialorder %v560_v61, %v315_v7  ;;  %vm330_vm11 = vcmp.le.f32.partialorder %v560_v61, %v317_v10 }
 0x1d2   :  { %vm337_vm7 = vmand %vm321_vm4, %vm329_vm5  ;;  %v404_v19 = vmul.f32 %v554_v0, %v517_v11  ;;  %v391_v25 = vadd.f32 %v518_v18, %v517_v11 }
 0x1d3   :  { %vm345_vm8 = vmand %vm336_vm6, %vm342_vm14  ;;  %v562_v5 = vpop.eup %561 }
 0x1d4   :  { %vm346_vm9 = vmand %vm337_vm7, %vm342_vm14  ;;  %v519_v21 = vsel %vm345_vm8, 1.0, %v590_v8  ;;  %v412_v22 = vadd.f32 %v405_v20, %v404_v19  ;;  %vm323_vm12 = vcmp.gt.f32.partialorder %v562_v5, %v315_v7  ;;  %vm331_vm13 = vcmp.le.f32.partialorder %v562_v5, %v317_v10  ;;  %v564_v26 = vpop.eup %563 }
 0x1d5   :  { %v520_v23 = vsel %vm346_vm9, 1.0, %v590_v8  ;;  %vm338_vm15 = vmand %vm322_vm10, %vm330_vm11  ;;  %v406_v24 = vmul.f32 %v556_v1, %v519_v21  ;;  %v392_v30 = vadd.f32 %v519_v21, %v391_v25  ;;  %vm324_vm3 = vcmp.gt.f32.partialorder %v564_v26, %v315_v7 }
 0x1d6   :  { %vm339_vm1 = vmand %vm323_vm12, %vm331_vm13  ;;  %v407_v27 = vmul.f32 %v558_v15, %v520_v23  ;;  %vm332_vm4 = vcmp.le.f32.partialorder %v564_v26, %v317_v10 }
 0x1d7   :  { %v413_v28 = vadd.f32 %v412_v22, %v406_v24  ;;  %vm347_vm0 = vmand %vm338_vm15, %vm342_vm14  ;;  %v566_v29 = vpop.eup %565  ;;  %v393_v32 = vadd.f32 %v520_v23, %v392_v30  ;;  %v29_v22 = vshrl.u32 %v28_v16, 7 }
 0x1d8   :  { %vm348_vm2 = vmand %vm339_vm1, %vm342_vm14  ;;  %v521_v9 = vsel %vm347_vm0, 1.0, %v590_v8  ;;  %vm325_vm5 = vcmp.gt.f32.partialorder %v566_v29, %v315_v7  ;;  %vm333_vm6 = vcmp.le.f32.partialorder %v566_v29, %v317_v10 }
 0x1d9   :  { %v414_v12 = vadd.f32 %v413_v28, %v407_v27  ;;  %v522_v31 = vsel %vm348_vm2, 1.0, %v590_v8  ;;  %vm340_vm7 = vmand %vm324_vm3, %vm332_vm4  ;;  %v408_v33 = vmul.f32 %v560_v61, %v521_v9  ;;  %v394_v38 = vadd.f32 %v521_v9, %v393_v32 }
 0x1da   :  { %vm341_vm8 = vmand %vm325_vm5, %vm333_vm6  ;;  %v409_v37 = vmul.f32 %v562_v5, %v522_v31  ;;  %vm486_vm11 = vcmp.eq.s32.totalorder %v29_v22, 0  ;;  %vm491_vm12 = vcmp.eq.s32.totalorder %v29_v22, 2 }
 0x1db   :  { %v415_v36 = vadd.f32 %v414_v12, %v408_v33  ;;  %vm349_vm9 = vmand %vm340_vm7, %vm342_vm14  ;;  %v395_v41 = vadd.f32 %v522_v31, %v394_v38 }
 0x1dc   :  { %vm350_vm10 = vmand %vm341_vm8, %vm342_vm14  ;;  %v523_v34 = vsel %vm349_vm9, 1.0, %v590_v8  ;;  %vm488_vm14 = vcmp.eq.s32.totalorder %v29_v22, 1 }
 0x1dd   :  { %v416_v13 = vadd.f32 %v415_v36, %v409_v37  ;;  %v524_v40 = vsel %vm350_vm10, 1.0, %v590_v8  ;;  %v410_v43 = vmul.f32 %v564_v26, %v523_v34  ;;  %v396_v49 = vadd.f32 %v523_v34, %v395_v41 }
 0x1de   :  { %v411_v45 = vmul.f32 %v566_v29, %v524_v40 }
 0x1df   :  { %v417_v44 = vadd.f32 %v416_v13, %v410_v43  ;;  %v397_v54 = vadd.f32 %v524_v40, %v396_v49 }
 0x1e1   :  { %v418_v52 = vadd.f32 %v417_v44, %v411_v45  ;;  %v398_v58 = vrot.slane %v397_v54, 4 }
 0x1e3   :  { %v419_v57 = vrot.slane %v418_v52, 4  ;;  %v399_v4 = vadd.f32 %v398_v58, %v397_v54 }
 0x1e5   :  { %v420_v62 = vadd.f32 %v419_v57, %v418_v52  ;;  %v400_v1 = vrot.slane %v399_v4, 2 }
 0x1e7   :  { %v421_v10 = vrot.slane %v420_v62, 2  ;;  %v401_v61 = vadd.f32 %v400_v1, %v399_v4 }
 0x22f   :  { %v438_v39 = vpop.permute.xlu1 %437 }
 0x230   :  { %v467_v17 = vmul.f32 %v519_v21, %v438_v39  ;;  %v402_v21 = vrot.slane %v401_v61, 1 }
 0x231   :  { %v531_v46 = vpop.permute.xlu0 %530 }
 0x232   :  { %v533_v47 = vunpack.i.h.bf16 %v531_v46  ;;  %v532_v48 = vunpack.i.l.bf16 %v531_v46  ;;  %v403_v26 = vadd.f32 %v402_v21, %v401_v61 }
 0x233   :  { %v443_v35 = vpop.permute.xlu1 %442 }
 0x234   :  { %v466_v50 = vmul.f32 %v533_v47, %v518_v18  ;;  %v465_v51 = vmul.f32 %v532_v48, %v517_v11  ;;  %v468_v55 = vmul.f32 %v520_v23, %v443_v35  ;;  %v422_v18 = vadd.f32 %v421_v10, %v420_v62 }
 0x235   :  { %v487_v30 = vsel %vm486_vm11, %v403_v26, 0.0 }
 0x236   :  { %v473_v53 = vadd.f32 %v466_v50, %v465_v51  ;;  %v423_v5 = vrot.slane %v422_v18, 1 }
 0x237   :  { %v448_v42 = vpop.permute.xlu1 %447 }
 0x238   :  { %v474_v56 = vadd.f32 %v473_v53, %v467_v17  ;;  %v469_v60 = vmul.f32 %v521_v9, %v448_v42  ;;  %v424_v24 = vadd.f32 %v423_v5, %v422_v18 }
 0x23a   :  { %v475_v8 = vadd.f32 %v474_v56, %v468_v55  ;;  %v489_v28 = vsel %vm488_vm14, %v424_v24, 0.0 }
 0x23b   :  { %v453_v59 = vpop.permute.xlu1 %452  ;;  %v490_v9 = vadd.f32 %v489_v28, %v487_v30 }
 0x23c   :  { %v476_v63 = vadd.f32 %v475_v8, %v469_v60  ;;  %v470_v3 = vmul.f32 %v522_v31, %v453_v59 }
 0x23e   :  { %v477_v0 = vadd.f32 %v476_v63, %v470_v3 }
 0x23f   :  { %v458_v6 = vpop.permute.xlu1 %457 }
 0x240   :  { %v471_v7 = vmul.f32 %v523_v34, %v458_v6 }
 0x242   :  { %v478_v15 = vadd.f32 %v477_v0, %v471_v7 }
 0x243   :  { %v463_v14 = vpop.permute.xlu1 %462 }
 0x244   :  { %v472_v2 = vmul.f32 %v524_v40, %v463_v14 }
 0x246   :  { %v479_v11 = vadd.f32 %v478_v15, %v472_v2 }
 0x248   :  { %v480_v20 = vrot.slane %v479_v11, 4 }
 0x24a   :  { %v481_v19 = vadd.f32 %v480_v20, %v479_v11 }
 0x24c   :  { %v482_v23 = vrot.slane %v481_v19, 2 }
 0x24e   :  { %v483_v25 = vadd.f32 %v482_v23, %v481_v19 }
 0x250   :  { %v484_v27 = vrot.slane %v483_v25, 1 }
 0x252   :  { %v485_v29 = vadd.f32 %v484_v27, %v483_v25 }
 0x254   :  { %v492_v12 = vsel %vm491_vm12, %v485_v29, 0.0 }
 0x255   :  { %v493_v31 = vadd.f32 %v492_v12, %v490_v9 }
 0x257   :  { %494 = vst [vmem:[#allocation2] sm:$0xff] %v493_v31 }
 0x258   :  { %578 = shalt.err (!%p575_p4)
}
 0x259   :  { %504 = dma.vmem_to_hbm [thread:$0]  %s502_s12, 128, %s866_s2, [#allocation3]  }
 0x25a   :  { %587 = dma.done.wait [#allocation3], 128  }
 0x25b   :  { %588 = vsyncadd [#allocation3], 4294967168 }
 0x25c   :  { %508 = vsyncpa [#allocation3], 1 }

</bundles_post_ra>
